<compile_context>
chip_gen: v5e
topology: v5e:2x2
jax: 0.10.0
libtpu: 0.0.40
codegen_flags: <defaults>
</compile_context>

<pallas_src>
import jax
import jax.numpy as jnp
from jax.experimental import pallas as pl
from jax.experimental.pallas import tpu as pltpu


_VMEM_LIMIT = 48 * 1024 * 1024        # below v7x's 64 MiB physical; plenty on v5e/v6e
_ENC_TILE_BUDGET = 24 * 1024 * 1024   # budget for the double-buffered enc tile


def _proj_kernel(dec_ref, w_ref, proj_ref):
    # proj = dec @ W^T, consuming W as stored (D_out, D_in):
    # contract dec dim 1 against W dim 1 (no transpose materialized, MXU).
    proj_ref[...] = jax.lax.dot_general(
        dec_ref[...], w_ref[...],
        dimension_numbers=(((1,), (1,)), ((), ())),
        preferred_element_type=jnp.float32)


def _score_kernel(proj_ref, enc_ref, out_ref):
    enc = enc_ref[...].astype(jnp.float32)                   # (TS, B, D)
    proj = proj_ref[...]                                     # (B, D) f32, resident
    # score[s, b] = sum_d enc[s, b, d] * proj[b, d]  (VPU mul + lane reduce)
    scores_sb = jnp.sum(enc * proj[None, :, :], axis=-1)     # (TS, B)
    # Small in-VMEM transpose so the stored block is lane-dense on S.
    out_ref[...] = scores_sb.T.astype(out_ref.dtype)         # (B, TS)


def _pick_seq_tile(S, B, D, itemsize):
    """Largest multiple-of-128 divisor of S whose double-buffered enc tile fits
    the VMEM budget; otherwise a single full-extent block (small-S fallback)."""
    if S % 128 != 0:
        return S
    ts = 128
    for cand in (256, 512, 1024):
        if S % cand == 0 and 2 * cand * B * D * itemsize <= _ENC_TILE_BUDGET:
            ts = cand
    return ts


def _pick_feat_tile(D):
    if D % 128 != 0:
        return D
    for cand in (512, 256, 128):
        if D % cand == 0:
            return cand
    return 128


@jax.jit
def general_scorer(dec_out, enc_outs, w_a):
    """dec_out: (B, D); enc_outs: (S, B, D); w_a: (D, D) -> scores (B, S)."""
    B, D = dec_out.shape
    S = enc_outs.shape[0]

    # --- 1) Hoisted projection: proj = dec_out @ W_a^T (tiny, computed once) ---
    td = _pick_feat_tile(D)
    proj = pl.pallas_call(
        _proj_kernel,
        out_shape=jax.ShapeDtypeStruct((B, D), jnp.float32),
        grid=(D // td,),
        in_specs=[
            pl.BlockSpec((B, D), lambda j: (0, 0)),     # dec, resident in VMEM
            pl.BlockSpec((td, D), lambda j: (j, 0)),    # rows (out-features) of W
        ],
        out_specs=pl.BlockSpec((B, td), lambda j: (0, j)),
        compiler_params=pltpu.CompilerParams(
            dimension_semantics=("parallel",),
            vmem_limit_bytes=_VMEM_LIMIT),
    )(dec_out, w_a)

    # --- 2) Streaming scorer: tile over S, enc consumed in native (S, B, D) ---
    # TODO(synk): B is kept whole per block; very large B*D would also need B tiling.
    ts = _pick_seq_tile(S, B, D, enc_outs.dtype.itemsize)
    scores = pl.pallas_call(
        _score_kernel,
        out_shape=jax.ShapeDtypeStruct((B, S), dec_out.dtype),
        grid=(S // ts,),
        in_specs=[
            pl.BlockSpec((B, D), lambda s: (0, 0)),          # proj, resident
            pl.BlockSpec((ts, B, D), lambda s: (s, 0, 0)),   # enc tile, streamed
        ],
        out_specs=pl.BlockSpec((B, ts), lambda s: (0, s)),   # lane-dense on S
        compiler_params=pltpu.CompilerParams(
            dimension_semantics=("parallel",),
            vmem_limit_bytes=_VMEM_LIMIT),
    )(proj, enc_outs)
    return scores


def general_scorer_ref(dec_out, enc_outs, w_a):
    proj = dec_out @ w_a.T                              # (B, D)
    return jnp.einsum("sbd,bd->bs", enc_outs, proj)     # (B, S)


if __name__ == "__main__":
    B, S, D = 2, 8, 32
    key = jax.random.PRNGKey(0)
    k_dec, k_enc, k_w = jax.random.split(key, 3)

    dec_out = jax.random.normal(k_dec, (B, D), dtype=jnp.float32)
    enc_outs = jax.random.normal(k_enc, (S, B, D), dtype=jnp.float32)
    # Deterministic init of W_a.weight (shape (D_out, D_in), bias=False).
    w_a = jax.random.normal(k_w, (D, D), dtype=jnp.float32) * (1.0 / jnp.sqrt(D))

    out = general_scorer(dec_out, enc_outs, w_a)
    out = jax.block_until_ready(out)

    ref = general_scorer_ref(dec_out, enc_outs, w_a)
    assert out.shape == (B, S)
    assert jnp.allclose(out, ref, atol=1e-3, rtol=1e-3), (
        float(jnp.max(jnp.abs(out - ref))))

    print("KERNEL_OK")
</pallas_src>

<mosaic_0001>
module attributes {stable_mosaic.version = 11 : i64} {
  func.func @_proj_kernel(%arg0: i32, %arg1: memref<2x32xf32, #tpu.memory_space<vmem>>, %arg2: memref<32x32xf32, #tpu.memory_space<vmem>>, %arg3: memref<2x32xf32, #tpu.memory_space<vmem>>) attributes {dimension_semantics = [#tpu.dimension_semantics<parallel>], iteration_bounds = array<i64: 1>, scalar_prefetch = 0 : i64, scratch_operands = 0 : i64, tpu.core_type = #tpu.core_type<tc>, window_params = [{pipeline_mode = #tpu.pipeline_mode<synchronous>, transform_indices = @transform_0, window_bounds = array<i64: 2, 32>}, {transform_indices = @transform_1, window_bounds = array<i64: 32, 32>}, {transform_indices = @transform_2, window_bounds = array<i64: 2, 32>}]} {
    %c0 = arith.constant 0 : index
    %c0_0 = arith.constant 0 : index
    %0 = vector.load %arg1[%c0, %c0_0] : memref<2x32xf32, #tpu.memory_space<vmem>>, vector<2x32xf32>
    %c0_1 = arith.constant 0 : index
    %c0_2 = arith.constant 0 : index
    %1 = vector.load %arg2[%c0_1, %c0_2] : memref<32x32xf32, #tpu.memory_space<vmem>>, vector<32x32xf32>
    %cst = arith.constant dense<0.000000e+00> : vector<2x32xf32>
    %2 = tpu.matmul %0, %1, %cst {dimension_numbers = #tpu.dot_dimension_numbers<[1], [1], [0], [0], [0, 0, 1, 0], [], []>} : vector<2x32xf32>, vector<32x32xf32>, vector<2x32xf32> -> vector<2x32xf32>
    %c0_3 = arith.constant 0 : index
    %c0_4 = arith.constant 0 : index
    %3 = vector.load %arg3[%c0_3, %c0_4] : memref<2x32xf32, #tpu.memory_space<vmem>>, vector<2x32xf32>
    tpu.vector_store %arg3[%c0_3, %c0_4], %2 {strides = array<i32>} : memref<2x32xf32, #tpu.memory_space<vmem>>, vector<2x32xf32>,
    return
  }
  func.func @transform_0(%arg0: i32) -> (i32, i32) {
    %c0_i32 = arith.constant 0 : i32
    %c0_i32_0 = arith.constant 0 : i32
    %c0_i32_1 = arith.constant 0 : i32
    return %c0_i32, %c0_i32_0 : i32, i32
  }
  func.func @transform_1(%arg0: i32) -> (i32, i32) {
    %c0_i32 = arith.constant 0 : i32
    %c0_i32_0 = arith.constant 0 : i32
    return %arg0, %c0_i32 : i32, i32
  }
  func.func @transform_2(%arg0: i32) -> (i32, i32) {
    %c0_i32 = arith.constant 0 : i32
    %c0_i32_0 = arith.constant 0 : i32
    return %c0_i32, %arg0 : i32, i32
  }
}

module attributes {stable_mosaic.version = 11 : i64} {
  func.func @_score_kernel(%arg0: i32, %arg1: memref<2x32xf32, #tpu.memory_space<vmem>>, %arg2: memref<8x2x32xf32, #tpu.memory_space<vmem>>, %arg3: memref<2x8xf32, #tpu.memory_space<vmem>>) attributes {dimension_semantics = [#tpu.dimension_semantics<parallel>], iteration_bounds = array<i64: 1>, scalar_prefetch = 0 : i64, scratch_operands = 0 : i64, tpu.core_type = #tpu.core_type<tc>, window_params = [{pipeline_mode = #tpu.pipeline_mode<synchronous>, transform_indices = @transform_0, window_bounds = array<i64: 2, 32>}, {transform_indices = @transform_1, window_bounds = array<i64: 8, 2, 32>}, {transform_indices = @transform_2, window_bounds = array<i64: 2, 8>}]} {
    %c0 = arith.constant 0 : index
    %c0_0 = arith.constant 0 : index
    %c0_1 = arith.constant 0 : index
    %0 = vector.load %arg2[%c0, %c0_0, %c0_1] : memref<8x2x32xf32, #tpu.memory_space<vmem>>, vector<8x2x32xf32>
    %c0_2 = arith.constant 0 : index
    %c0_3 = arith.constant 0 : index
    %1 = vector.load %arg1[%c0_2, %c0_3] : memref<2x32xf32, #tpu.memory_space<vmem>>, vector<2x32xf32>
    %2 = vector.shape_cast %1 : vector<2x32xf32> to vector<1x2x32xf32>
    %3 = vector.broadcast %2 : vector<1x2x32xf32> to vector<8x2x32xf32>
    %4 = arith.mulf %0, %3 : vector<8x2x32xf32>
    %cst = arith.constant dense<0.000000e+00> : vector<8x2xf32>
    %5 = vector.multi_reduction <add>, %4, %cst [2] : vector<8x2x32xf32> to vector<8x2xf32>
    %6 = tpu.transpose %5, [1, 0] : vector<8x2xf32> -> vector<2x8xf32>
    %c0_4 = arith.constant 0 : index
    %c0_5 = arith.constant 0 : index
    %7 = vector.load %arg3[%c0_4, %c0_5] : memref<2x8xf32, #tpu.memory_space<vmem>>, vector<2x8xf32>
    tpu.vector_store %arg3[%c0_4, %c0_5], %6 {strides = array<i32>} : memref<2x8xf32, #tpu.memory_space<vmem>>, vector<2x8xf32>,
    return
  }
  func.func @transform_0(%arg0: i32) -> (i32, i32) {
    %c0_i32 = arith.constant 0 : i32
    %c0_i32_0 = arith.constant 0 : i32
    %c0_i32_1 = arith.constant 0 : i32
    return %c0_i32, %c0_i32_0 : i32, i32
  }
  func.func @transform_1(%arg0: i32) -> (i32, i32, i32) {
    %c0_i32 = arith.constant 0 : i32
    %c0_i32_0 = arith.constant 0 : i32
    %c0_i32_1 = arith.constant 0 : i32
    return %arg0, %c0_i32, %c0_i32_0 : i32, i32, i32
  }
  func.func @transform_2(%arg0: i32) -> (i32, i32) {
    %c0_i32 = arith.constant 0 : i32
    %c0_i32_0 = arith.constant 0 : i32
    return %c0_i32, %arg0 : i32, i32
  }
}

</mosaic_0001>

<bundles_post_ra>
// kernel: general_scorer.3
= control target key start
LH: loop header
LB: loop body
LE: loop exit
PB: predicated region body
PF: predicated region fallthrough
CT: control target
= control target key end

     0   :  { %7 = vsyncpa [#allocation3], 0  ;;  %s247_s0 = inlined_call_operand.vmem [shape: f32[2,32], index: 0, kind: input, shape index: {}]   ;;  %s248_s1 = inlined_call_operand.hbm [shape: f32[8,2,32], index: 1, kind: input, shape index: {}]   ;;  %s249_s2 = inlined_call_operand.hbm [shape: f32[2,8], index: 2, kind: output, shape index: {}]  }
   0x1   :  { %8 = vsyncpa [#allocation4], 0  ;;  %s15_s11 = sshll.u32 %s248_s1, 4  ;;  %s211_s12 = smov [#allocation2]   ;;  %s16_s11 = int_to_ptr.hbm [resolvable:$true] %s15_s11 }
   0x2   :  { %s17_s13 = sshll.u32 %s211_s12, 4  ;;  %s212_s14 = smov 32   ;;  %s18_s13 = int_to_ptr.vmem [resolvable:$true] %s17_s13 }
   0x3   :  { %s213_s15 = smov 2  }
   0x4   :  { %23 = dma.hbm_to_vmem [thread:$0]  %s16_s11, 256, %s18_s13, [#allocation3], %s212_s14, %s212_s14, %s213_s15  }
   0x5   :  { %207 = dma.done.wait [#allocation3], 256  }
   0x6   :  { %208 = vsyncadd [#allocation3], 4294967040  ;;  %vm45_vm0 = vcmask 254976   ;;  %v28_v0 = vld [vmem:[#allocation2] sm:$0x3]  ;;  %v78_v27 = vlaneseq  ;;  %vm88_vm1 = vcmask 1041409  }
   0x7   :  { %v36_v1 = vld [vmem:[%s247_s0] sm:$0x3]  ;;  %v30_v2 = vld [vmem:[#allocation2 + $0x4] sm:$0x3]  ;;  %v32_v5 = vld [vmem:[#allocation2 + $0x8] sm:$0x3] }
   0x8   :  { %v37_v3 = vmul.f32 %v36_v1, %v28_v0  ;;  %v39_v4 = vmul.f32 %v36_v1, %v30_v2  ;;  %v41_v6 = vmul.f32 %v36_v1, %v32_v5  ;;  %v29_v7 = vld [vmem:[#allocation2 + $0x2] sm:$0x3]  ;;  %v31_v8 = vld [vmem:[#allocation2 + $0x6] sm:$0x3]  ;;  %v33_v11 = vld [vmem:[#allocation2 + $0xa] sm:$0x3] }
   0x9   :  { %v38_v13 = vmul.f32 %v36_v1, %v29_v7  ;;  %v40_v14 = vmul.f32 %v36_v1, %v31_v8  ;;  %v42_v15 = vmul.f32 %v36_v1, %v33_v11  ;;  %v34_v19 = vld [vmem:[#allocation2 + $0xc] sm:$0x3]  ;;  %v35_v20 = vld [vmem:[#allocation2 + $0xe] sm:$0x3]  ;;  %v79_v29 = vand.u32 127, %v78_v27  ;;  %s214_s0 = smov [#allocation5]  }
   0xa   :  { %v46_v9 = vsel %vm45_vm0, %v37_v3, 0.0  ;;  %v52_v10 = vsel %vm45_vm0, %v39_v4, 0.0  ;;  %v58_v12 = vsel %vm45_vm0, %v41_v6, 0.0  ;;  %v43_v21 = vmul.f32 %v36_v1, %v34_v19  ;;  %s142_s1 = sshll.u32 %s214_s0, 4  ;;  %s144_s20 = sshll.u32 %s249_s2, 4  ;;  %s143_s1 = int_to_ptr.vmem [resolvable:$true] %s142_s1  ;;  %s145_s20 = int_to_ptr.hbm [resolvable:$true] %s144_s20 }
   0xb   :  { %47 = vadd.xlane.f32.xlu0 %v46_v9  ;;  %53 = vadd.xlane.f32.xlu1 %v52_v10  ;;  %v49_v16 = vsel %vm45_vm0, %v38_v13, 0.0  ;;  %v55_v17 = vsel %vm45_vm0, %v40_v14, 0.0  ;;  %v61_v18 = vsel %vm45_vm0, %v42_v15, 0.0  ;;  %v44_v22 = vmul.f32 %v36_v1, %v35_v20 }
   0xc   :  { %59 = vadd.xlane.f32.xlu2 %v58_v12  ;;  %v64_v23 = vsel %vm45_vm0, %v43_v21, 0.0  ;;  %vm90_vm2 = vcmask 1042434   ;;  %vm92_vm3 = vcmask 1043459   ;;  %vm94_vm4 = vcmask 1044484  }
   0xd   :  { %v67_v24 = vsel %vm45_vm0, %v44_v22, 0.0  ;;  %vm96_vm5 = vcmask 1045509   ;;  %vm98_vm6 = vcmask 1046534   ;;  %vm100_vm7 = vcmask 1047559  }
   0xe   :  { %vm135_vm8 = vcmask 58368  }
  0x13   :  { %50 = vadd.xlane.f32.xlu0 %v49_v16  ;;  %56 = vadd.xlane.f32.xlu1 %v55_v17 }
  0x14   :  { %62 = vadd.xlane.f32.xlu2 %v61_v18 }
  0x1b   :  { %65 = vadd.xlane.f32.xlu0 %v64_v23  ;;  %68 = vadd.xlane.f32.xlu1 %v67_v24 }
  0x7e   :  { %v48_v25 = vpop.xlane.xlu0 %47  ;;  %v54_v26 = vpop.xlane.xlu1 %53 }
  0x7f   :  { %v60_v28 = vpop.xlane.xlu2 %59  ;;  %v80_v32 = vperm.slane %v48_v25, %v79_v29  ;;  %v82_v35 = vperm.slane %v54_v26, %v79_v29 }
  0x80   :  { %v84_v39 = vperm.slane %v60_v28, %v79_v29 }
  0x86   :  { %v51_v30 = vpop.xlane.xlu0 %50  ;;  %v57_v31 = vpop.xlane.xlu1 %56 }
  0x87   :  { %v81_v33 = vperm.slane %v51_v30, %v79_v29  ;;  %v83_v34 = vperm.slane %v57_v31, %v79_v29  ;;  %v63_v37 = vpop.xlane.xlu2 %62 }
  0x88   :  { %v85_v41 = vperm.slane %v63_v37, %v79_v29 }
  0x89   :  { %v89_v36 = vsel %vm88_vm1, %v81_v33, %v80_v32 }
  0x8a   :  { %v91_v38 = vsel %vm90_vm2, %v82_v35, %v89_v36 }
  0x8b   :  { %v93_v40 = vsel %vm92_vm3, %v83_v34, %v91_v38 }
  0x8c   :  { %v95_v42 = vsel %vm94_vm4, %v84_v39, %v93_v40 }
  0x8d   :  { %v97_v47 = vsel %vm96_vm5, %v85_v41, %v95_v42 }
  0x8e   :  { %v66_v43 = vpop.xlane.xlu0 %65  ;;  %v69_v44 = vpop.xlane.xlu1 %68 }
  0x8f   :  { %v86_v45 = vperm.slane %v66_v43, %v79_v29  ;;  %v87_v46 = vperm.slane %v69_v44, %v79_v29 }
  0x91   :  { %v99_v48 = vsel %vm98_vm6, %v86_v45, %v97_v47 }
  0x92   :  { %v101_v49 = vsel %vm100_vm7, %v87_v46, %v99_v48 }
  0x93   :  { %103 = vxpose.xlu2.b32.start.end [1/1] (short) (narrow) %v101_v49, 8 }
 0x12c   :  { %v119_v50 = vpop.trf.xlu2 }
 0x12d   :  { %136 = vst.msk [vmem:[#allocation5] sm:$0x3] %vm135_vm8, %v119_v50 }
 0x12e   :  { %147 = dma.vmem_to_hbm [thread:$0]  %s143_s1, 32, %s145_s20, [#allocation4]  }
 0x12f   :  { %209 = dma.done.wait [#allocation4], 32  }
 0x130   :  { %210 = vsyncadd [#allocation4], 4294967264 }
 0x131   :  { %152 = vsyncpa [#allocation3], 1 }
 0x132   :  { %153 = vsyncpa [#allocation4], 1 }

// kernel: general_scorer.2
= control target key start
LH: loop header
LB: loop body
LE: loop exit
PB: predicated region body
PF: predicated region fallthrough
CT: control target
= control target key end

     0   :  { %7 = vsyncpa [#allocation3], 0  ;;  %s179_s0 = inlined_call_operand.hbm [shape: f32[2,32], index: 0, kind: input, shape index: {}]   ;;  %s180_s1 = inlined_call_operand.hbm [shape: f32[32,32], index: 1, kind: input, shape index: {}]   ;;  %s181_s2 = inlined_call_operand.vmem [shape: f32[2,32], index: 2, kind: output, shape index: {}]  }
   0x1   :  { %s14_s11 = sshll.u32 %s179_s0, 4  ;;  %s15_s11 = int_to_ptr.hbm [resolvable:$true] %s14_s11 }
   0x2   :  { %8 = vsyncpa [#allocation5], 0  ;;  %s151_s12 = smov [#allocation2]   ;;  %s24_s16 = sshll.u32 %s180_s1, 4  ;;  %s25_s16 = int_to_ptr.hbm [resolvable:$true] %s24_s16 }
   0x3   :  { %s16_s13 = sshll.u32 %s151_s12, 4  ;;  %s152_s17 = smov [#allocation4]   ;;  %s17_s13 = int_to_ptr.vmem [resolvable:$true] %s16_s13 }
   0x4   :  { %19 = dma.hbm_to_vmem [thread:$0]  %s15_s11, 32, %s17_s13, [#allocation3]  }
   0x5   :  { %s26_s18 = sshll.u32 %s152_s17, 4  ;;  %s153_s19 = smov 128   ;;  %s27_s18 = int_to_ptr.vmem [resolvable:$true] %s26_s18 }
   0x6   :  { %s154_s20 = smov 8  }
   0x7   :  { %32 = dma.hbm_to_vmem [thread:$0]  %s25_s16, 512, %s27_s18, [#allocation5], %s153_s19, %s153_s19, %s154_s20  }
   0x8   :  { %147 = dma.done.wait [#allocation3], 32  }
   0x9   :  { %148 = vsyncadd [#allocation3], 4294967264 }
   0xa   :  { %149 = dma.done.wait [#allocation5], 512  }
   0xb   :  { %150 = vsyncadd [#allocation5], 4294966784  ;;  %vm46_vm0 = vcmask 261120   ;;  %v45_v0 = vld [vmem:[#allocation4 + $0x18] sm:$0xff]  ;;  %v44_v1 = vld [vmem:[#allocation4 + $0x10] sm:$0xff]  ;;  %vm82_vm1 = vcmask 254976  }
   0xc   :  { %90 = vmatpush.xpose.msk.msra.mxu0 %vm46_vm0, %v45_v0  ;;  %v43_v2 = vld [vmem:[#allocation4 + $0x8] sm:$0xff]  ;;  %v42_v3 = vld [vmem:[#allocation4] sm:$0xff]  ;;  %v41_v4 = vld [vmem:[#allocation2] sm:$0x3] }
  0x10   :  { %91 = vmatpush.xpose.msk.msra.mxu0 %vm46_vm0, %v44_v1 }
  0x14   :  { %92 = vmatpush.xpose.msk.msra.mxu0 %vm46_vm0, %v43_v2 }
  0x18   :  { %93 = vmatpush.xpose.msk.msra.mxu0 %vm46_vm0, %v42_v3 }
  0x1b   :  { %94 = vmatmul.msk.f32.vlgmr.msra.gmra.mxu0 %vm46_vm0, %v41_v4 }
  0x98   :  { %v79_v5 = vpop.f32.mrf.mxu0 }
  0x99   :  { %83 = vst.msk [vmem:[%s181_s2] sm:$0x3] %vm82_vm1, %v79_v5 }
  0x9a   :  { %88 = vsyncpa [#allocation3], 1 }
  0x9b   :  { %89 = vsyncpa [#allocation5], 1 }

</bundles_post_ra>
